<compile_context>
chip_gen: v7x
topology: tpu7x:2x2x1
jax: 0.10.0
libtpu: 0.0.40
codegen_flags: <defaults>
</compile_context>

<pallas_src>
import functools

import jax
import jax.numpy as jnp
from jax.experimental import pallas as pl
from jax.experimental.pallas import tpu as pltpu


def _round_up(n, m):
    return ((n + m - 1) // m) * m


def _center_loss_kernel(labels_ref, x_ref, centers_ref, out_ref, *, true_b):
    # labels_ref:  (TB, 1)  int32 — labels for this row tile
    # x_ref:       (TB, D)  f32   — feature rows for this tile
    # centers_ref: (C, D)   f32   — full centers, VMEM-resident across the grid
    # out_ref:     (1, 128) f32   — this tile's partial sum (lane-dense block)
    tb = x_ref.shape[0]
    num_classes = centers_ref.shape[0]
    i = pl.program_id(0)

    labels = labels_ref[...]                                            # (TB, 1)
    class_ids = jax.lax.broadcasted_iota(jnp.int32, (tb, num_classes), 1)
    onehot = (labels == class_ids).astype(jnp.float32)                  # (TB, C)

    # Gather centers[labels] via a tiny one-hot matmul on the (otherwise idle) MXU.
    gathered = jnp.dot(onehot, centers_ref[...],
                       preferred_element_type=jnp.float32)              # (TB, D)

    diff = x_ref[...] - gathered                                        # (TB, D)
    dist = jnp.sum(diff * diff, axis=-1, keepdims=True)                 # (TB, 1)
    # clamp the per-row distance (after the D reduction), like torch .clamp
    dist = jnp.clip(dist, 1e-12, 1e12)

    # Mask rows that are padding in the (possibly partial) last tile.
    row_ids = i * tb + jax.lax.broadcasted_iota(jnp.int32, (tb, 1), 0)
    dist = jnp.where(row_ids < true_b, dist, 0.0)

    partial = jnp.sum(dist)                                             # scalar
    out_ref[...] = jnp.full((1, 128), partial, dtype=jnp.float32)


def center_loss(x, centers, labels, *, tile_b=256):
    """x: (B, D) f32, centers: (C, D) f32, labels: (B,) int -> scalar f32."""
    b, d = x.shape
    c, _ = centers.shape

    x = x.astype(jnp.float32)
    centers = centers.astype(jnp.float32)
    labels = labels.astype(jnp.int32)

    # Tile size: multiple of 8, no larger than needed for tiny batches.
    tb = min(int(tile_b), _round_up(b, 8))
    tb = _round_up(tb, 8)
    num_tiles = pl.cdiv(b, tb)
    b_pad = num_tiles * tb

    if b_pad != b:
        x = jnp.pad(x, ((0, b_pad - b), (0, 0)))
        labels = jnp.pad(labels, (0, b_pad - b))      # pad label 0 (masked anyway)
    labels2d = labels.reshape(b_pad, 1)

    partials = pl.pallas_call(
        functools.partial(_center_loss_kernel, true_b=b),
        out_shape=jax.ShapeDtypeStruct((1, num_tiles * 128), jnp.float32),
        grid=(num_tiles,),
        in_specs=[
            pl.BlockSpec((tb, 1), lambda i: (i, 0)),   # per-tile labels
            pl.BlockSpec((tb, d), lambda i: (i, 0)),   # per-tile feature rows
            pl.BlockSpec((c, d), lambda i: (0, 0)),    # centers: resident in VMEM
        ],
        out_specs=pl.BlockSpec((1, 128), lambda i: (0, i)),  # lane-dense partials
        compiler_params=pltpu.CompilerParams(
            # independent per-tile partial sums -> megacore-shardable on v7x
            dimension_semantics=("parallel",),
            # NOTE: default scoped VMEM (16/32 MiB on v5e / v6e+v7x) is ample here
            # (centers + 2x double-buffered (tb, d) tiles). Raise vmem_limit_bytes
            # only if tile_b or feat_dim grow substantially.
        ),
    )(labels2d, x, centers)

    per_tile = partials.reshape(num_tiles, 128)[:, 0]
    return jnp.sum(per_tile) / b


def center_loss_ref(x, centers, labels):
    """Pure-JAX reference matching the PyTorch forward (matmul-form distmat)."""
    c, _ = centers.shape
    distmat = (
        jnp.sum(x * x, axis=1, keepdims=True)
        + jnp.sum(centers * centers, axis=1, keepdims=True).T
        - 2.0 * x @ centers.T
    )
    mask = labels[:, None] == jnp.arange(c)[None, :]
    picked = jnp.sum(jnp.where(mask, jnp.clip(distmat, 1e-12, 1e12), 0.0), axis=1)
    return jnp.mean(picked)


if __name__ == "__main__":
    num_classes = 8
    feat_dim = 256
    batch = 20   # deliberately not a multiple of the tile -> exercises padding/mask

    key = jax.random.PRNGKey(0)
    k_x, k_c, k_l = jax.random.split(key, 3)

    x = jax.random.normal(k_x, (batch, feat_dim), dtype=jnp.float32)
    centers = jax.random.normal(k_c, (num_classes, feat_dim), dtype=jnp.float32)
    labels = jax.random.randint(k_l, (batch,), 0, num_classes, dtype=jnp.int32)

    # multi-tile path: 3 tiles of 8 rows, last tile padded + masked
    loss_multi = center_loss(x, centers, labels, tile_b=8)
    jax.block_until_ready(loss_multi)

    # single-tile path (default tile size clamps to round_up(batch, 8))
    loss_single = center_loss(x, centers, labels)
    jax.block_until_ready(loss_single)

    ref = center_loss_ref(x, centers, labels)
    # The exact ||x - c||^2 gather form is numerically tighter than the
    # ||x||^2 + ||c||^2 - 2 x c^T reference; allow small fp32 cancellation slack.
    assert jnp.allclose(loss_multi, ref, rtol=1e-4, atol=1e-4), (loss_multi, ref)
    assert jnp.allclose(loss_single, ref, rtol=1e-4, atol=1e-4), (loss_single, ref)

    print("KERNEL_OK")
</pallas_src>

<mosaic_0001>
module attributes {stable_mosaic.version = 11 : i64} {
  func.func @_center_loss_kernel(%arg0: i32, %arg1: memref<8x1xi32, #tpu.memory_space<vmem>>, %arg2: memref<8x256xf32, #tpu.memory_space<vmem>>, %arg3: memref<8x256xf32, #tpu.memory_space<vmem>>, %arg4: memref<1x128xf32, #tpu.memory_space<vmem>>) attributes {dimension_semantics = [#tpu.dimension_semantics<parallel>], iteration_bounds = array<i64: 3>, scalar_prefetch = 0 : i64, scratch_operands = 0 : i64, tpu.core_type = #tpu.core_type<tc>, window_params = [{transform_indices = @transform_0, window_bounds = array<i64: 8, 1>}, {transform_indices = @transform_1, window_bounds = array<i64: 8, 256>}, {pipeline_mode = #tpu.pipeline_mode<synchronous>, transform_indices = @transform_2, window_bounds = array<i64: 8, 256>}, {transform_indices = @transform_3, window_bounds = array<i64: 1, 128>}]} {
    %c0 = arith.constant 0 : index
    %c0_0 = arith.constant 0 : index
    %0 = vector.load %arg1[%c0, %c0_0] : memref<8x1xi32, #tpu.memory_space<vmem>>, vector<8x1xi32>
    %1 = tpu.iota {dimensions = array<i32: 1>} : vector<8x8xi32>
    %2 = vector.broadcast %0 : vector<8x1xi32> to vector<8x8xi32>
    %3 = arith.cmpi eq, %2, %1 : vector<8x8xi32>
    %4 = arith.extui %3 : vector<8x8xi1> to vector<8x8xi32>
    %5 = arith.sitofp %4 : vector<8x8xi32> to vector<8x8xf32>
    %c0_1 = arith.constant 0 : index
    %c0_2 = arith.constant 0 : index
    %6 = vector.load %arg3[%c0_1, %c0_2] : memref<8x256xf32, #tpu.memory_space<vmem>>, vector<8x256xf32>
    %cst = arith.constant dense<0.000000e+00> : vector<8x256xf32>
    %7 = tpu.matmul %5, %6, %cst {dimension_numbers = #tpu.dot_dimension_numbers<[1], [0], [0], [1], [0, 0, 1, 1], [], []>} : vector<8x8xf32>, vector<8x256xf32>, vector<8x256xf32> -> vector<8x256xf32>
    %c0_3 = arith.constant 0 : index
    %c0_4 = arith.constant 0 : index
    %8 = vector.load %arg2[%c0_3, %c0_4] : memref<8x256xf32, #tpu.memory_space<vmem>>, vector<8x256xf32>
    %9 = arith.subf %8, %7 : vector<8x256xf32>
    %10 = arith.mulf %9, %9 : vector<8x256xf32>
    %cst_5 = arith.constant dense<0.000000e+00> : vector<8xf32>
    %11 = vector.multi_reduction <add>, %10, %cst_5 [1] : vector<8x256xf32> to vector<8xf32>
    %12 = vector.shape_cast %11 : vector<8xf32> to vector<8x1xf32>
    %cst_6 = arith.constant 9.99999996E-13 : f32
    %cst_7 = arith.constant 9.99999995E+11 : f32
    %13 = vector.broadcast %cst_6 : f32 to vector<8x1xf32>
    %14 = arith.maximumf %13, %12 : vector<8x1xf32>
    %15 = vector.broadcast %cst_7 : f32 to vector<8x1xf32>
    %16 = arith.minimumf %15, %14 : vector<8x1xf32>
    %c8_i32 = arith.constant 8 : i32
    %17 = arith.muli %arg0, %c8_i32 : i32
    %18 = tpu.iota {dimensions = array<i32: 0>} : vector<8x1xi32>
    %19 = vector.broadcast %17 : i32 to vector<8x1xi32>
    %20 = arith.addi %19, %18 : vector<8x1xi32>
    %c20_i32 = arith.constant 20 : i32
    %21 = vector.broadcast %c20_i32 : i32 to vector<8x1xi32>
    %22 = arith.cmpi slt, %20, %21 : vector<8x1xi32>
    %cst_8 = arith.constant 0.000000e+00 : f32
    %23 = vector.broadcast %cst_8 : f32 to vector<8x1xf32>
    %24 = arith.select %22, %16, %23 : vector<8x1xi1>, vector<8x1xf32>
    %25 = vector.shape_cast %24 : vector<8x1xf32> to vector<1x8x1xf32>
    %cst_9 = arith.constant dense<0.000000e+00> : vector<1xf32>
    %26 = vector.multi_reduction <add>, %25, %cst_9 [1, 2] : vector<1x8x1xf32> to vector<1xf32>
    %27 = vector.shape_cast %26 : vector<1xf32> to vector<1x1x1xf32>
    %28 = vector.extract %27[0, 0, 0] : f32 from vector<1x1x1xf32>
    %29 = vector.broadcast %28 : f32 to vector<1x128xf32>
    %c0_10 = arith.constant 0 : index
    %c0_11 = arith.constant 0 : index
    %30 = vector.load %arg4[%c0_10, %c0_11] : memref<1x128xf32, #tpu.memory_space<vmem>>, vector<1x128xf32>
    tpu.vector_store %arg4[%c0_10, %c0_11], %29 {strides = array<i32>} : memref<1x128xf32, #tpu.memory_space<vmem>>, vector<1x128xf32>,
    return
  }
  func.func @transform_0(%arg0: i32) -> (i32, i32) {
    %c0_i32 = arith.constant 0 : i32
    %c0_i32_0 = arith.constant 0 : i32
    return %arg0, %c0_i32 : i32, i32
  }
  func.func @transform_1(%arg0: i32) -> (i32, i32) {
    %c0_i32 = arith.constant 0 : i32
    %c0_i32_0 = arith.constant 0 : i32
    return %arg0, %c0_i32 : i32, i32
  }
  func.func @transform_2(%arg0: i32) -> (i32, i32) {
    %c0_i32 = arith.constant 0 : i32
    %c0_i32_0 = arith.constant 0 : i32
    %c0_i32_1 = arith.constant 0 : i32
    return %c0_i32, %c0_i32_0 : i32, i32
  }
  func.func @transform_3(%arg0: i32) -> (i32, i32) {
    %c0_i32 = arith.constant 0 : i32
    %c0_i32_0 = arith.constant 0 : i32
    return %c0_i32, %arg0 : i32, i32
  }
}

</mosaic_0001>

<bundles_post_ra>
// kernel: tpu_custom_call.1
= control target key start
LH: loop header
LB: loop body
LE: loop exit
PB: predicated region body
PF: predicated region fallthrough
CT: control target
= control target key end

     0   :  { %8 = vsyncpa [#allocation3], 0  ;;  %s772_s0 = inlined_call_operand.vmem [shape: s32[24,1], index: 0, kind: input, shape index: {}]   ;;  %s773_s1 = inlined_call_operand.hbm [shape: f32[24,256], index: 1, kind: input, shape index: {}]   ;;  %s774_s2 = inlined_call_operand.vmem [shape: f32[8,256], index: 2, kind: input, shape index: {}]   ;;  %s775_s3 = inlined_call_operand.hbm [shape: f32[1,384], index: 3, kind: output, shape index: {}]  }
   0x1   :  { %10 = vsyncpa [#allocation3 + $0x1], 0 }
   0x2   :  { %11 = vsyncpa [#allocation4], 0 }
   0x3   :  { %13 = vsyncpa [#allocation4 + $0x1], 0  ;;  %s600_s12 = smov 0   ;;  %s602_s13 = smov 0  }
   0x4   :  { %s604_s14 = smov 0   ;;  %s606_s15 = smov 0  }
   0x5 LB: > { %s621_s16 = sadd.s32 4294967295, %s574_s15   ;;  %s411_s17 = sadd.s32 4294967294, %s574_s15   ;;  %s574_s15 = sphi %s606_s15, %s789_s15   ;;  %s570_s14 = sphi %s604_s14, %s788_s14   ;;  %s566_s13 = sphi %s602_s13, %s787_s13   ;;  %s562_s12 = sphi %s600_s12, %s786_s12  }
   0x6   : > { %s625_s18 = sadd.s32 1, %s574_s15   ;;  %s52_s19 = sadd.s32 1, %s570_s14 }
   0x7   : > { %s49_s20 = ssub.s32 %s574_s15, %s625_s18  ;;  %p59_p0 = scmp.ne.s32.totalorder %s570_s14, %s566_s13 }
   0x8   : > { %p50_p1 = scmp.eq.s32.totalorder %s49_s20, 0  ;;  %p60_p2 = scmp.eq.s32.totalorder %s574_s15, 0 }
   0x9   : > { %p65_p3 = scmp.ne.s32.totalorder %s566_s13, %s562_s12  ;;  %p66_p4 = scmp.eq.s32.totalorder %s621_s16, 0 }
   0xa   : > { %s637_s21 = scalar_select %p50_p1, %s570_s14, %s52_s19  }
   0xb   : > { %p639_p5 = por %p60_p2, %p59_p0  ;;  %p643_p6 = por %p66_p4, %p65_p3 }
   0xc   : > { %p110_p7 = scmp.eq.s32.totalorder %s621_s16, 2  ;;  %p116_p8 = scmp.eq.s32.totalorder %s411_s17, 2 }
   0xd   : > { %p441_p9 = scmp.lt.s32.totalorder %s574_s15, 3  ;;  %s146_s26 = sand.u32 1, %s570_s14  }
   0xe   : > { %p649_p10 = por %p110_p7, %p59_p0  ;;  %p653_p11 = por %p116_p8, %p65_p3 }
   0xf   : > { %s426_s27 = sshll.u32 %s574_s15, 8  ;;  %s414_s28 = sshll.u32 %s146_s26, 4 }
  0x10   : > { %s779_s24 = scalar_select %p649_p10, 1, 0 }
  0x11   : > { %s780_s25 = scalar_select %p653_p11, 1, 0 }
  0x12   : > { %s662_s4 = scalar_lea.hbm %s773_s1, %s426_s27  ;;  %s150_s5 = scalar_lea.vmem [#allocation2], %s414_s28 }
  0x13   : > { %s158_s6 = sshll.u32 %s150_s5, 4  ;;  %p666_p12 = pnand %p441_p9, %p639_p5  ;;  %s670_s6 = int_to_ptr.vmem [resolvable:$true] %s158_s6 }
  0x14   : > { %s147_s8 = scalar_lea.sflag [#allocation3], %s146_s26  ;;  %s478_s9 = scalar_lea.hbm %s662_s4, 256 }
  0x15   : > { %p479_p1 = scmp.ne.s32.totalorder %s662_s4, %s478_s9  ;;  %p480_p2 = pneg %p666_p12 }
  0x16   : > { %s483_s17 = scalar_lea.hbm %s773_s1, 768  ;;  %p484_p5 = scmp.lt.u32.totalorder %s662_s4, %s773_s1 }
  0x17   : > { %p481_p3 = pnand %p480_p2, %p479_p1  ;;  %p485_p7 = scmp.lt.u32.totalorder %s483_s17, %s478_s9 }
  0x18   : > { %p487_p9 = scmp.lt.u32.totalorder %s478_s9, %s662_s4 }
  0x19   : > { %p482_p4 = pneg %p481_p3  ;;  %p486_p8 = por %p485_p7, %p484_p5 }
  0x1b   : > { %p488_p13 = por %p487_p9, %p486_p8 }
  0x1d   : > { %p489_p0 = pnand %p488_p13, %p482_p4 }
  0x1f   : > { %492 = shalt.err (!%p489_p0)
}
  0x20   : > { %s493_s22 = scalar_lea.vmem %s670_s6, 256  ;;  %s576_s26 = smov [#allocation2]  }
  0x21   : > { %p494_p1 = scmp.ne.s32.totalorder %s670_s6, %s493_s22  ;;  %s498_s27 = sshll.u32 %s576_s26, 4  ;;  %s499_s27 = int_to_ptr.vmem [resolvable:$false] %s498_s27 }
  0x22   : > { %s500_s28 = scalar_lea.vmem %s499_s27, 512  ;;  %p501_p10 = scmp.lt.s32.totalorder %s670_s6, %s499_s27 }
  0x23   : > { %p496_p3 = pnand %p494_p1, %p480_p2  ;;  %p502_p5 = scmp.lt.s32.totalorder %s500_s28, %s493_s22 }
  0x25   : > { %p497_p11 = pneg %p496_p3  ;;  %p503_p7 = por %p502_p5, %p501_p10 }
  0x27   : > { %p504_p8 = pnand %p503_p7, %p497_p11 }
  0x29   : > { %507 = shalt.err (!%p504_p8)
}
  0x2a   : > { %436 = dma.hbm_to_vmem [thread:$0]  (!%p666_p12), %s662_s4, 256, %s670_s6, %s147_s8  }
  0x2b   : > { %p782_p13 = scmp.lt.s32.totalorder %s574_s15, 4  ;;  %p783_p0 = scmp.ge.s32.totalorder %s574_s15, 1 }
  0x2d   : > { %p164_p2 = pnand %p783_p0, %p782_p13 }
  0x2e   : > { %s704_s29 = sand.u32 (!%p164_p2), 1, %s566_s13  }
  0x2f   : > { %167 = sbr.rel (%p164_p2) target bundleno = 778 (0x30a), region = 32  ;;  %s418_s30 = sshll.u32 (!%p164_p2), %s704_s29, 4 }
  0x30   : > { %s170_s5 = scalar_lea.sflag (!%p164_p2), [#allocation3], %s704_s29  ;;  %s173_s9 = scalar_lea.vmem (!%p164_p2), [#allocation2], %s418_s30 }
  0x36   : > { %553 = dma.done.wait (%p643_p6), %s170_s5, 256  }
  0x37   : > { %555 = vsyncadd (%p643_p6), %s170_s5, 4294967040  ;;  %p199_p10 = scmp.lt.s32.totalorder %s621_s16, 2  ;;  %v577_v0 = vmov 0   ;;  %v213_v2 = vld [vmem:[%s774_s2 + $0x8] sm:$0xff]  ;;  %v212_v3 = vld [vmem:[%s774_s2] sm:$0xff]  ;;  %v578_v4 = vmov 0.0   ;;  %v204_v5 = vlaneseq }
  0x38   : > { %477 = vset.pattern.permute.xlu0 %v577_v0  ;;  %218 = vmatprep.subr.mxu0 %v213_v2  ;;  %vm214_vm0 = vcmask 64512   ;;  %v289_v9 = vld [vmem:[%s173_s9] sm:$0xff]  ;;  %v290_v10 = vld [vmem:[%s173_s9 + $0x8] sm:$0xff]  ;;  %s422_s20 = sshll.u32 %s621_s16, 3  ;;  %vm307_vm3 = vcmask 7168   ;;  %s198_s22 = scalar_lea.vmem [#allocation5], %s704_s29 }
  0x39   : > { %s200_s4 = scalar_select %p199_p10, %s621_s16, 2  ;;  %219 = vmatpush1.msra.mxu0 %v212_v3  ;;  %282 = vmatprep.mubr.f32.mxu0 %v578_v4  ;;  %v205_v6 = vand.u32 127, %v204_v5  ;;  %v302_v18 = vshrl.u32 %v204_v5, 7  ;;  %v303_v19 = vstv %s422_s20 }
  0x3a   : > { %s333_s26 = sshll.u32 %s198_s22, 4  ;;  %s423_s27 = sshll.u32 %s621_s16, 4  ;;  %s726_s26 = int_to_ptr.vmem [resolvable:$true] %s333_s26 }
  0x3b   : > { %s419_s6 = sshll.u32 %s200_s4, 3  ;;  %v304_v20 = vadd.s32 %v303_v19, %v302_v18  ;;  %s731_s9 = scalar_lea.hbm %s775_s3, %s423_s27 }
  0x3c   : > { %s202_s10 = scalar_lea.vmem %s772_s0, %s419_s6  ;;  %s321_s4 = scalar_lea.sflag [#allocation4], %s704_s29 }
  0x3d   : > { %v203_v1 = vld [vmem:[%s202_s10] sm:$0xff]  ;;  %vm305_vm2 = vcmp.lt.s32.totalorder %v304_v20, 20  ;;  %s508_s6 = scalar_lea.vmem %s726_s26, 16  ;;  %p784_p11 = scmp.ne.s32.totalorder %s779_s24, 0 }
  0x3e   : > { %207 = vperm.xlu0 %477, %v203_v1   ;;  %p509_p6 = scmp.ne.s32.totalorder %s726_s26, %s508_s6  ;;  %s579_s16 = smov [#allocation5]  }
  0x3f   : > { %s512_s7 = sshll.u32 %s579_s16, 4  ;;  %s513_s7 = int_to_ptr.vmem [resolvable:$false] %s512_s7 }
  0x40   : > { %p510_p12 = pnand %p509_p6, %p784_p11  ;;  %s514_s8 = scalar_lea.vmem %s513_s7, 32 }
  0x41   : > { %p515_p9 = scmp.lt.s32.totalorder %s726_s26, %s513_s7  ;;  %p516_p1 = scmp.lt.s32.totalorder %s514_s8, %s508_s6 }
  0x42   : > { %p511_p4 = pneg %p510_p12 }
  0x43   : > { %p517_p3 = por %p516_p1, %p515_p9 }
  0x45   : > { %p518_p5 = pnand %p517_p3, %p511_p4 }
  0xbd   : > { %v208_v7 = vpop.permute.xlu0 %207 }
  0xbe   : > { %vm209_vm1 = vcmp.eq.s32.totalorder %v208_v7, %v205_v6 }
  0xbf   : > { %v420_v8 = vsel %vm209_vm1, 1.0, %v578_v4 }
  0xc0   : > { %421 = vmatmul.mubr.msk.f32.vlgmr.msra.gmra.mrb[0].mxu0 %vm214_vm0, %v420_v8 }
 0x193   : > { %v284_v11 = vpop.f32.mrb[0].mxu0 }
 0x194   : > { %v291_v12 = vsub.f32 %v289_v9, %v284_v11  ;;  %v286_v13 = vpop.f32.mrb[1].mxu0 }
 0x195   : > { %v292_v14 = vsub.f32 %v290_v10, %v286_v13 }
 0x196   : > { %v293_v15 = vmul.f32 %v291_v12, %v291_v12 }
 0x197   : > { %v294_v16 = vmul.f32 %v292_v14, %v292_v14 }
 0x199   : > { %v295_v17 = vadd.f32 %v294_v16, %v293_v15 }
 0x19b   : > { %296 = vadd.xlane.f32.xlu0 %v295_v17 }
 0x228   : > { %v297_v21 = vpop.xlane.xlu0 %296 }
 0x229   : > { %v298_v22 = vmax.f32 %v297_v21, 1e-12 }
 0x22b   : > { %v299_v23 = vmin.f32 %v298_v22, 1e+12 }
 0x22d   : > { %v306_v24 = vsel %vm305_vm2, %v299_v23, 0.0 }
 0x22e   : > { %v308_v25 = vsel %vm307_vm3, %v306_v24, 0.0 }
 0x22f   : > { %309 = vadd.xlane.f32.xlu1 %v308_v25 }
 0x2bc   : > { %v310_v26 = vpop.xlane.xlu1 %309 }
 0x2bd   : > { %v311_v27 = vrot.slane %v310_v26, 4 }
 0x2bf   : > { %v312_v28 = vadd.f32 %v311_v27, %v310_v26 }
 0x2c1   : > { %v313_v29 = vrot.slane %v312_v28, 2 }
 0x2c3   : > { %v314_v30 = vadd.f32 %v313_v29, %v312_v28 }
 0x2c5   : > { %v315_v31 = vrot.slane %v314_v30, 1 }
 0x2c7   : > { %v316_v32 = vadd.f32 %v315_v31, %v314_v30 }
 0x2c9   : > { %427 = vpush %v316_v32 }
 0x2fa   : > { %s428_s28 = spop %427 }
 0x2fb   : > { %v318_v33 = vstv %s428_s28 }
 0x2fc   : > { %319 = vst [vmem:[%s198_s22] sm:$0x1] %v318_v33 }
 0x2fd   : > { %521 = shalt.err (!%p518_p5)
}
 0x2fe   : > { %s522_s29 = scalar_lea.hbm %s731_s9, 16  ;;  %s526_s17 = scalar_lea.hbm %s775_s3, 48 }
 0x2ff   : > { %p523_p7 = scmp.ne.s32.totalorder %s731_s9, %s522_s29  ;;  %p527_p0 = scmp.lt.u32.totalorder %s731_s9, %s775_s3 }
 0x300   : > { %p528_p2 = scmp.lt.u32.totalorder %s526_s17, %s522_s29  ;;  %p530_p6 = scmp.lt.u32.totalorder %s522_s29, %s731_s9 }
 0x301   : > { %p524_p8 = pnand %p523_p7, %p784_p11 }
 0x302   : > { %p529_p10 = por %p528_p2, %p527_p0 }
 0x303   : > { %p525_p13 = pneg %p524_p8 }
 0x304   : > { %p531_p12 = por %p530_p6, %p529_p10 }
 0x306   : > { %p532_p4 = pnand %p531_p12, %p525_p13 }
 0x308   : > { %535 = shalt.err (!%p532_p4)
}
 0x309   : > { %431 = dma.vmem_to_hbm [thread:$0]  (%p784_p11), %s726_s26, 16, %s731_s9, %s321_s4  }
 0x30a PF: > { %p442_p9 = scmp.ge.s32.totalorder %s574_s15, 2  ;;  %s345_s20 = sand.u32 1, %s562_s12  }
 0x30b   : > { %p785_p1 = scmp.ne.s32.totalorder %s780_s25, 0  ;;  %s346_s22 = scalar_lea.sflag [#allocation4], %s345_s20 }
 0x30d   : > { %p438_p3 = pnand %p442_p9, %p785_p1 }
 0x30f   : > { %557 = dma.done.wait (!%p438_p3), %s346_s22, 16  }
 0x310   : > { %559 = vsyncadd (!%p438_p3), %s346_s22, 4294967280  ;;  %p16_p5 = scmp.ge.s32.totalorder %s625_s18, 5   ;;  %s786_s12 = smov %s566_s13 }
 0x311   : > { %s787_s13 = smov %s570_s14  ;;  %s788_s14 = smov %s637_s21 }
 0x312   : > { %s789_s15 = smov %s625_s18  ;;  %18 = sbr.rel (!%p16_p5) target bundleno = 5 (0x5), region = 80 }
 0x319   :  { %350 = vsyncpa [#allocation3], 1 }
 0x31a   :  { %352 = vsyncpa [#allocation3 + $0x1], 1 }
 0x31b   :  { %353 = vsyncpa [#allocation4], 1 }
 0x31c   :  { %355 = vsyncpa [#allocation4 + $0x1], 1 }

</bundles_post_ra>
